<compile_context>
chip_gen: v7x
topology: tpu7x:2x2x1
jax: 0.10.0
libtpu: 0.0.40
codegen_flags: <defaults>
</compile_context>

<pallas_src>
import jax
import jax.numpy as jnp
from jax import lax
from jax.experimental import pallas as pl
from jax.experimental.pallas import tpu as pltpu


def _round_up(x, m):
    return (x + m - 1) // m * m


def _vmem_capacity_bytes():
    """Physical per-core VMEM; conservative fallback (v7x = 64 MiB) if the query fails."""
    try:
        return int(pltpu.get_tpu_info().vmem_capacity_bytes)
    except Exception:
        return 64 * 1024 * 1024


def _clip_head_kernel(feat_ref, w_ref, b_ref, out_ref, inv_ref):
    """Fused L2-normalize (dim=-1) folded into Linear:
       out = (f @ W) * rsqrt(max(||f||^2, eps^2)) + b.

    Grid = (batch tiles [parallel], class tiles [arbitrary, innermost]).
    The feature tile is resident across the class axis; the per-row scale is computed
    once per batch tile (j == 0) and cached in a (tile_b, 1) f32 VMEM scratch.
    """
    @pl.when(pl.program_id(1) == 0)
    def _():
        f32 = feat_ref[...].astype(jnp.float32)            # (tb, D) f32 temp
        ssq = jnp.sum(f32 * f32, axis=-1, keepdims=True)    # (tb, 1) f32 reduction
        # F.normalize eps: 1/max(||f||, 1e-12) == rsqrt(max(||f||^2, 1e-24)); EUP slot.
        inv_ref[...] = lax.rsqrt(jnp.maximum(ssq, 1e-24))

    # bf16 (or native) operands straight into the MXU, f32 accumulation.
    y = jnp.dot(feat_ref[...], w_ref[...], preferred_element_type=jnp.float32)  # (tb, tc)
    out_ref[...] = (y * inv_ref[...] + b_ref[...].astype(jnp.float32)).astype(out_ref.dtype)


def openclip_linear_head(features, fc_weight, fc_bias, *,
                         compute_dtype=jnp.bfloat16, max_tile_b=1024, tile_c=None):
    """Fused F.normalize(dim=-1) + ChannelLinear head of OpenClipLinear.

    features : (B, D) backbone features (pre-normalization).
    fc_weight: (C, D) PyTorch nn.Linear layout.
    fc_bias  : (C,).
    Returns  : (B, C) in features.dtype.
    """
    B, D = features.shape
    C, D2 = fc_weight.shape
    assert D == D2, (D, D2)

    out_dtype = features.dtype
    cdt = jnp.dtype(compute_dtype if compute_dtype is not None else features.dtype)
    c_item = cdt.itemsize
    sublane = max(8, 32 // c_item)                    # 8 f32 / 16 bf16 / 32 int8-fp8

    # Lane-dense class dim; 256-wide N tiles for big heads (2x256 MXU on v6e/v7x).
    if tile_c is None:
        tile_c = 128 if C <= 128 else 256
    C_pad = _round_up(max(C, 1), tile_c)

    # --- batch tiling -------------------------------------------------------------
    # Feature-tile budget = 1/4 of physical VMEM (32 MiB on v5e/v6e, 16 MiB on v7x);
    # this is the double-buffered streamed operand, so plenty of headroom remains.
    vmem_cap = _vmem_capacity_bytes()
    feat_budget = vmem_cap // 4
    tile_cap = max(sublane, (feat_budget // (2 * D * c_item)) // sublane * sublane)

    # Tile count first (bounds padding waste to < sublane rows per tile), then force
    # nb >= 2 whenever splittable so both v7x TensorCores get work.
    nb = pl.cdiv(B, min(int(max_tile_b), int(tile_cap)))
    if nb == 1 and B > sublane:
        nb = 2
    tile_b = _round_up(pl.cdiv(B, nb), sublane)
    B_pad = nb * tile_b
    nc = C_pad // tile_c

    # --- glue-level prep (outside the kernel hot loop) ------------------------------
    f_c = features.astype(cdt)
    f_pad = f_c if B_pad == B else jnp.pad(f_c, ((0, B_pad - B), (0, 0)))
    w_t = jnp.pad(fc_weight.T.astype(cdt), ((0, 0), (0, C_pad - C)))            # (D, C_pad)
    b2 = jnp.pad(fc_bias.astype(jnp.float32).reshape(1, C),
                 ((0, 0), (0, C_pad - C)))                                      # (1, C_pad)

    # --- VMEM accounting (double buffers + f32 temps + scratch) ---------------------
    out_item = jnp.dtype(out_dtype).itemsize
    vmem_needed = (2 * tile_b * D * c_item          # streamed feature tile (x2 buffers)
                   + tile_b * D * 4                 # f32 cast temp for the ssq reduction
                   + 2 * D * tile_c * c_item        # weight tile (x2 buffers)
                   + 2 * 1 * tile_c * 4             # bias tile
                   + 2 * tile_b * tile_c * out_item  # output tile (x2 buffers)
                   + tile_b * tile_c * 4            # f32 matmul result temp
                   + tile_b * 128 * 4)              # inv scratch (lane-padded)
    vmem_limit = int(min(max(vmem_needed + vmem_needed // 2 + (4 << 20), 16 << 20),
                         vmem_cap * 3 // 4))

    out = pl.pallas_call(
        _clip_head_kernel,
        out_shape=jax.ShapeDtypeStruct((B_pad, C_pad), out_dtype),
        grid_spec=pltpu.PrefetchScalarGridSpec(
            num_scalar_prefetch=0,
            grid=(nb, nc),
            in_specs=[
                # streamed feature tile; resident across the (innermost) class axis
                pl.BlockSpec((tile_b, D), lambda i, j: (i, 0)),
                # weight tile; re-DMA'd per class step (nb * D * C_pad bytes total) —
                # acceptable for small heads; swap residency for huge C.
                pl.BlockSpec((D, tile_c), lambda i, j: (0, j)),
                pl.BlockSpec((1, tile_c), lambda i, j: (0, j)),    # bias tile
            ],
            out_specs=pl.BlockSpec((tile_b, tile_c), lambda i, j: (i, j)),
            scratch_shapes=[pltpu.VMEM((tile_b, 1), jnp.float32)],  # cached rsqrt(||f||^2)
        ),
        compiler_params=pltpu.CompilerParams(
            # class axis must be sequential (innermost) so the cached inv is valid;
            # batch axis shards across TensorCores (v7x megacore).
            dimension_semantics=("parallel", "arbitrary"),
            vmem_limit_bytes=vmem_limit),
    )(f_pad, w_t, b2)

    return out[:B, :C]


if __name__ == "__main__":
    # Small synthetic shapes consistent with the module:
    #   B = batch of images, D = backbone feature dim (output_dim), C = num_classes.
    B, D, C = 8, 256, 1

    key = jax.random.PRNGKey(0)
    k_feat, k_w, k_b = jax.random.split(key, 3)

    # Stand-in for backbone.encode_image output (pre-normalization features).
    features = jax.random.normal(k_feat, (B, D), dtype=jnp.float32)

    # fc = ChannelLinear(num_features, num_classes); weight ~ N(0, 0.02), small bias.
    fc_weight = 0.02 * jax.random.normal(k_w, (C, D), dtype=jnp.float32)
    fc_bias = 0.01 * jax.random.normal(k_b, (C,), dtype=jnp.float32)

    out = openclip_linear_head(features, fc_weight, fc_bias)
    out = jax.block_until_ready(out)
    assert out.shape == (B, C), out.shape

    # Matching-precision reference (bf16 operands, f32 accumulation) — tight tolerance.
    f_bf = features.astype(jnp.bfloat16)
    w_bf = fc_weight.astype(jnp.bfloat16)
    f32 = f_bf.astype(jnp.float32)
    inv = lax.rsqrt(jnp.maximum(jnp.sum(f32 * f32, axis=-1, keepdims=True), 1e-24))
    ref_match = jnp.dot(f_bf, w_bf.T, preferred_element_type=jnp.float32) * inv + fc_bias[None, :]
    err_match = float(jnp.max(jnp.abs(out - ref_match)))
    assert jnp.allclose(out, ref_match, atol=1e-4, rtol=1e-4), \
        f"mismatch vs matched-precision reference, max_err={err_match}"

    # Full fp32 reference (F.normalize then Linear) — loose tolerance for bf16 streaming.
    fn_ref = features / jnp.maximum(jnp.linalg.norm(features, axis=-1, keepdims=True), 1e-12)
    ref_f32 = fn_ref @ fc_weight.T + fc_bias[None, :]
    err_f32 = float(jnp.max(jnp.abs(out - ref_f32)))
    assert jnp.allclose(out, ref_f32, atol=2e-3, rtol=5e-2), \
        f"mismatch vs fp32 reference, max_err={err_f32}"

    print("KERNEL_OK")
</pallas_src>

<mosaic_0001>
module attributes {stable_mosaic.version = 11 : i64} {
  func.func @_clip_head_kernel(%arg0: i32, %arg1: i32, %arg2: memref<16x256xbf16, #tpu.memory_space<vmem>>, %arg3: memref<256x128xbf16, #tpu.memory_space<vmem>>, %arg4: memref<1x128xf32, #tpu.memory_space<vmem>>, %arg5: memref<16x128xf32, #tpu.memory_space<vmem>>, %arg6: memref<16x1xf32, #tpu.memory_space<vmem>>) attributes {dimension_semantics = [#tpu.dimension_semantics<parallel>, #tpu.dimension_semantics<arbitrary>], iteration_bounds = array<i64: 1, 1>, scalar_prefetch = 0 : i64, scratch_operands = 1 : i64, tpu.core_type = #tpu.core_type<tc>, window_params = [{transform_indices = @transform_0, window_bounds = array<i64: 16, 256>}, {transform_indices = @transform_1, window_bounds = array<i64: 256, 128>}, {transform_indices = @transform_2, window_bounds = array<i64: 1, 128>}, {transform_indices = @transform_3, window_bounds = array<i64: 16, 128>}]} {
    %c0_i32 = arith.constant 0 : i32
    %0 = arith.cmpi eq, %arg1, %c0_i32 : i32
    %1 = arith.extui %0 : i1 to i32
    %c0_i32_0 = arith.constant 0 : i32
    %2 = arith.cmpi ne, %1, %c0_i32_0 : i32
    scf.if %2 {
      %c0_10 = arith.constant 0 : index
      %c0_11 = arith.constant 0 : index
      %13 = vector.load %arg2[%c0_10, %c0_11] : memref<16x256xbf16, #tpu.memory_space<vmem>>, vector<16x256xbf16>
      %14 = arith.extf %13 : vector<16x256xbf16> to vector<16x256xf32>
      %15 = arith.mulf %14, %14 : vector<16x256xf32>
      %cst_12 = arith.constant dense<0.000000e+00> : vector<16xf32>
      %16 = vector.multi_reduction <add>, %15, %cst_12 [1] : vector<16x256xf32> to vector<16xf32>
      %17 = vector.shape_cast %16 : vector<16xf32> to vector<16x1xf32>
      %cst_13 = arith.constant 1.000000e-24 : f32
      %18 = vector.broadcast %cst_13 : f32 to vector<16x1xf32>
      %19 = arith.maximumf %17, %18 : vector<16x1xf32>
      %20 = math.rsqrt %19 : vector<16x1xf32>
      %c0_14 = arith.constant 0 : index
      %c0_15 = arith.constant 0 : index
      %21 = vector.load %arg6[%c0_14, %c0_15] : memref<16x1xf32, #tpu.memory_space<vmem>>, vector<16x1xf32>
      tpu.vector_store %arg6[%c0_14, %c0_15], %20 {strides = array<i32>} : memref<16x1xf32, #tpu.memory_space<vmem>>, vector<16x1xf32>,
    } else {
    }
    %c0 = arith.constant 0 : index
    %c0_1 = arith.constant 0 : index
    %3 = vector.load %arg2[%c0, %c0_1] : memref<16x256xbf16, #tpu.memory_space<vmem>>, vector<16x256xbf16>
    %c0_2 = arith.constant 0 : index
    %c0_3 = arith.constant 0 : index
    %4 = vector.load %arg3[%c0_2, %c0_3] : memref<256x128xbf16, #tpu.memory_space<vmem>>, vector<256x128xbf16>
    %cst = arith.constant dense<0.000000e+00> : vector<16x128xf32>
    %5 = tpu.matmul %3, %4, %cst {dimension_numbers = #tpu.dot_dimension_numbers<[1], [0], [0], [1], [0, 0, 1, 1], [], []>} : vector<16x256xbf16>, vector<256x128xbf16>, vector<16x128xf32> -> vector<16x128xf32>
    %c0_4 = arith.constant 0 : index
    %c0_5 = arith.constant 0 : index
    %6 = vector.load %arg6[%c0_4, %c0_5] : memref<16x1xf32, #tpu.memory_space<vmem>>, vector<16x1xf32>
    %7 = vector.broadcast %6 : vector<16x1xf32> to vector<16x128xf32>
    %8 = arith.mulf %5, %7 : vector<16x128xf32>
    %c0_6 = arith.constant 0 : index
    %c0_7 = arith.constant 0 : index
    %9 = vector.load %arg4[%c0_6, %c0_7] : memref<1x128xf32, #tpu.memory_space<vmem>>, vector<1x128xf32>
    %10 = vector.broadcast %9 : vector<1x128xf32> to vector<16x128xf32>
    %11 = arith.addf %8, %10 : vector<16x128xf32>
    %c0_8 = arith.constant 0 : index
    %c0_9 = arith.constant 0 : index
    %12 = vector.load %arg5[%c0_8, %c0_9] : memref<16x128xf32, #tpu.memory_space<vmem>>, vector<16x128xf32>
    tpu.vector_store %arg5[%c0_8, %c0_9], %11 {strides = array<i32>} : memref<16x128xf32, #tpu.memory_space<vmem>>, vector<16x128xf32>,
    return
  }
  func.func @transform_0(%arg0: i32, %arg1: i32) -> (i32, i32) {
    %c0_i32 = arith.constant 0 : i32
    %c0_i32_0 = arith.constant 0 : i32
    return %arg0, %c0_i32 : i32, i32
  }
  func.func @transform_1(%arg0: i32, %arg1: i32) -> (i32, i32) {
    %c0_i32 = arith.constant 0 : i32
    %c0_i32_0 = arith.constant 0 : i32
    return %c0_i32, %arg1 : i32, i32
  }
  func.func @transform_2(%arg0: i32, %arg1: i32) -> (i32, i32) {
    %c0_i32 = arith.constant 0 : i32
    %c0_i32_0 = arith.constant 0 : i32
    return %c0_i32, %arg1 : i32, i32
  }
  func.func @transform_3(%arg0: i32, %arg1: i32) -> (i32, i32) {
    %c0_i32 = arith.constant 0 : i32
    return %arg0, %arg1 : i32, i32
  }
}

</mosaic_0001>

<bundles_post_ra>
// kernel: tpu_custom_call.1
= control target key start
LH: loop header
LB: loop body
LE: loop exit
PB: predicated region body
PF: predicated region fallthrough
CT: control target
= control target key end

     0   :  { %8 = vsyncpa [#allocation4], 0  ;;  %s513_s0 = inlined_call_operand.hbm [shape: bf16[16,256], index: 0, kind: input, shape index: {}]   ;;  %s514_s1 = inlined_call_operand.hbm [shape: bf16[256,128], index: 1, kind: input, shape index: {}]   ;;  %s515_s2 = inlined_call_operand.vmem [shape: f32[1,128], index: 2, kind: input, shape index: {}]   ;;  %s516_s3 = inlined_call_operand.hbm [shape: f32[16,128], index: 3, kind: output, shape index: {}]  }
   0x1   :  { %9 = vsyncpa [#allocation7], 0 }
   0x2   :  { %10 = vsyncpa [#allocation5], 0  ;;  %s440_s12 = smov [#allocation3]   ;;  %s368_s16 = scalar_lea.hbm %s513_s0, 256 }
   0x3   :  { %s16_s13 = sshll.u32 %s440_s12, 4  ;;  %p369_p0 = scmp.ne.s32.totalorder %s513_s0, %s368_s16  ;;  %s17_s13 = int_to_ptr.vmem [resolvable:$true] %s16_s13 }
   0x4   :  { %p372_p1 = scmp.lt.u32.totalorder %s368_s16, %s513_s0 }
   0x6   :  { %p374_p2 = pnand %p372_p1, %p369_p0 }
   0x8   :  { %377 = shalt.err (!%p374_p2)
}
   0x9   :  { %s378_s21 = scalar_lea.vmem %s17_s13, 256  ;;  %p383_p4 = scmp.lt.s32.totalorder %s17_s13, %s17_s13 }
   0xa   :  { %p379_p3 = scmp.ne.s32.totalorder %s17_s13, %s378_s21  ;;  %p384_p5 = scmp.lt.s32.totalorder %s378_s21, %s378_s21 }
   0xc   :  { %p385_p6 = por %p384_p5, %p383_p4 }
   0xe   :  { %p386_p7 = pnand %p385_p6, %p379_p3 }
  0x10   :  { %389 = shalt.err (!%p386_p7)
}
  0x11   :  { %s441_s22 = smov 128   ;;  %s442_s23 = smov 8  }
  0x12   :  { %22 = dma.hbm_to_vmem [thread:$0]  %s513_s0, 256, %s17_s13, [#allocation4], %s441_s22, %s441_s22, %s442_s23  }
  0x13   :  { %s443_s26 = smov [#allocation6]   ;;  %s390_s30 = scalar_lea.hbm %s514_s1, 2048 }
  0x14   :  { %s28_s27 = sshll.u32 %s443_s26, 4  ;;  %p391_p8 = scmp.ne.s32.totalorder %s514_s1, %s390_s30  ;;  %s29_s27 = int_to_ptr.vmem [resolvable:$true] %s28_s27 }
  0x15   :  { %p394_p9 = scmp.lt.u32.totalorder %s390_s30, %s514_s1 }
  0x17   :  { %p396_p10 = pnand %p394_p9, %p391_p8 }
  0x19   :  { %399 = shalt.err (!%p396_p10)
}
  0x1a   :  { %s400_s8 = scalar_lea.vmem %s29_s27, 2048  ;;  %p405_p12 = scmp.lt.s32.totalorder %s29_s27, %s29_s27 }
  0x1b   :  { %p401_p11 = scmp.ne.s32.totalorder %s29_s27, %s400_s8  ;;  %p406_p13 = scmp.lt.s32.totalorder %s400_s8, %s400_s8 }
  0x1d   :  { %p407_p0 = por %p406_p13, %p405_p12 }
  0x1f   :  { %p408_p1 = pnand %p407_p0, %p401_p11 }
  0x21   :  { %411 = shalt.err (!%p408_p1)
}
  0x22   :  { %s444_s0 = smov 64   ;;  %s445_s9 = smov 4  }
  0x23   :  { %34 = dma.hbm_to_vmem [thread:$0]  %s514_s1, 2048, %s29_s27, [#allocation7], %s444_s0, %s444_s0, %s445_s9  }
  0x24   :  { %434 = dma.done.wait [#allocation4], 256  }
  0x25   :  { %435 = vsyncadd [#allocation4], 4294967040 }
  0x26   :  { %436 = dma.done.wait [#allocation7], 2048  }
  0x27   :  { %437 = vsyncadd [#allocation7], 4294965248  ;;  %v48_v0 = vld [vmem:[#allocation3] sm:$0xff]  ;;  %v49_v1 = vld [vmem:[#allocation3 + $0x8] sm:$0xff]  ;;  %v446_v30 = vmov 0   ;;  %vm68_vm0 = vcmask 7168  }
  0x28   :  { %v50_v2 = vunpack.c.l.bf16 %v48_v0  ;;  %v51_v3 = vunpack.c.h.bf16 %v48_v0  ;;  %v52_v4 = vunpack.c.l.bf16 %v49_v1  ;;  %v53_v5 = vunpack.c.h.bf16 %v49_v1  ;;  %v346_v6 = vld [vmem:[#allocation6 + $0x40] sm:$0xff]   ;;  %v348_v13 = vld [vmem:[#allocation6 + $0x48] sm:$0xff]   ;;  %v350_v16 = vld [vmem:[#allocation6 + $0x50] sm:$0xff]   ;;  %344 = vset.pattern.permute.xlu1 %v446_v30  ;;  %345 = vset.pattern.permute.xlu0 %v446_v30  ;;  %s447_s13 = smov [#allocation8]  }
  0x29   :  { %v347_v7 = vld [vmem:[#allocation6] sm:$0xff]   ;;  %v296_v8 = vcombine.high %v48_v0, %v49_v1  ;;  %314 = vmatprep.subr.bf16.mxu0 %v346_v6  ;;  %v349_v14 = vld [vmem:[#allocation6 + $0x8] sm:$0xff]   ;;  %v351_v18 = vld [vmem:[#allocation6 + $0x10] sm:$0xff]   ;;  %v295_v29 = vcombine.low %v48_v0, %v49_v1  ;;  %s282_s14 = sshll.u32 %s447_s13, 4  ;;  %s283_s14 = int_to_ptr.vmem [resolvable:$true] %s282_s14 }
  0x2a   :  { %v54_v9 = vmul.f32 %v50_v2, %v50_v2  ;;  %v55_v10 = vmul.f32 %v51_v3, %v51_v3  ;;  %v56_v11 = vmul.f32 %v52_v4, %v52_v4  ;;  %v57_v12 = vmul.f32 %v53_v5, %v53_v5  ;;  %315 = vmatpush3.bf16.msra.mxu0 %v347_v7  ;;  %v352_v19 = vld [vmem:[#allocation6 + $0x58] sm:$0xff]   ;;  %v354_v21 = vld [vmem:[#allocation6 + $0x60] sm:$0xff]   ;;  %v356_v23 = vld [vmem:[#allocation6 + $0x68] sm:$0xff]   ;;  %s412_s15 = scalar_lea.vmem %s283_s14, 256  ;;  %p417_p3 = scmp.lt.s32.totalorder %s283_s14, %s283_s14 }
  0x2b   :  { %243 = vmatprep.mubr.bf16.mxu0 %v296_v8  ;;  %316 = vmatprep.subr.bf16.mxu0 %v348_v13  ;;  %v353_v20 = vld [vmem:[#allocation6 + $0x18] sm:$0xff]   ;;  %v355_v22 = vld [vmem:[#allocation6 + $0x20] sm:$0xff]   ;;  %v357_v24 = vld [vmem:[#allocation6 + $0x28] sm:$0xff]   ;;  %p413_p2 = scmp.ne.s32.totalorder %s283_s14, %s412_s15  ;;  %p418_p4 = scmp.lt.s32.totalorder %s412_s15, %s412_s15 }
  0x2c   :  { %v58_v15 = vadd.f32 %v55_v10, %v54_v9  ;;  %v61_v17 = vadd.f32 %v57_v12, %v56_v11  ;;  %v358_v25 = vld [vmem:[#allocation6 + $0x70] sm:$0xff]   ;;  %v360_v27 = vld [vmem:[#allocation6 + $0x78] sm:$0xff]   ;;  %v313_v45 = vld [vmem:[%s515_s2] ss:$0 sm:$0xff] }
  0x2d   :  { %v359_v26 = vld [vmem:[#allocation6 + $0x30] sm:$0xff]   ;;  %v361_v28 = vld [vmem:[#allocation6 + $0x38] sm:$0xff]   ;;  %p419_p5 = por %p418_p4, %p417_p3 }
  0x2e   :  { %59 = vadd.xlane.f32.xlu0 %v58_v15  ;;  %317 = vmatpush3.bf16.msra.mxu0 %v349_v14 }
  0x2f   :  { %318 = vmatprep.subr.bf16.mxu0 %v350_v16  ;;  %p420_p6 = pnand %p419_p5, %p413_p2 }
  0x32   :  { %62 = vadd.xlane.f32.xlu0 %v61_v17  ;;  %319 = vmatpush3.bf16.msra.mxu0 %v351_v18 }
  0x33   :  { %320 = vmatprep.subr.bf16.mxu0 %v352_v19 }
  0x36   :  { %321 = vmatpush3.bf16.msra.mxu0 %v353_v20 }
  0x37   :  { %322 = vmatprep.subr.bf16.mxu0 %v354_v21 }
  0x3a   :  { %323 = vmatpush3.bf16.msra.mxu0 %v355_v22 }
  0x3b   :  { %324 = vmatprep.subr.bf16.mxu0 %v356_v23 }
  0x3e   :  { %325 = vmatpush3.bf16.msra.mxu0 %v357_v24 }
  0x3f   :  { %326 = vmatprep.subr.bf16.mxu0 %v358_v25 }
  0x42   :  { %327 = vmatpush3.bf16.msra.mxu0 %v359_v26 }
  0x43   :  { %328 = vmatprep.subr.bf16.mxu0 %v360_v27 }
  0x46   :  { %329 = vmatpush3.bf16.msra.mxu0 %v361_v28 }
  0x49   :  { %244 = vmatmul.mubr.bf16.vlgmr.msra.gmra.mrb[0].mxu0 %v295_v29 }
  0xbb   :  { %v60_v31 = vpop.xlane.xlu0 %59 }
  0xbc   :  { %v64_v32 = vmax.f32 %v60_v31, 1e-24 }
  0xbe   :  { %364 = vrsqrt.f32 %v64_v32 }
  0xbf   :  { %v63_v33 = vpop.xlane.xlu0 %62 }
  0xc0   :  { %v65_v34 = vmax.f32 %v63_v33, 1e-24 }
  0xc2   :  { %366 = vrsqrt.f32 %v65_v34 }
  0xc8   :  { %v365_v35 = vpop.eup %364 }
  0xc9   :  { %69 = vst.msk [vmem:[#allocation2] sm:$0xff] %vm68_vm0, %v365_v35 }
  0xcc   :  { %v367_v36 = vpop.eup %366 }
  0xcd   :  { %70 = vst.msk [vmem:[#allocation2 + $0x8] sm:$0xff] %vm68_vm0, %v367_v36 }
  0xd0   :  { %v252_v37 = vld [vmem:[#allocation2] sm:$0xff] }
  0xd1   :  { %256 = vperm.xlu1 %344, %v252_v37  }
  0xd4   :  { %v253_v38 = vld [vmem:[#allocation2 + $0x8] sm:$0xff] }
  0xd5   :  { %261 = vperm.xlu1 %344, %v253_v38  }
 0x11c   :  { %v330_v39 = vpop.f32.mrb[0].mxu0 }
 0x11d   :  { %v331_v40 = vpop.f32.mrb[1].mxu0 }
 0x11e   :  { %v332_v41 = vadd.f32 %v331_v40, %v330_v39  ;;  %v333_v42 = vpop.f32.mrb[2].mxu0 }
 0x11f   :  { %v334_v43 = vpop.f32.mrb[3].mxu0 }
 0x120   :  { %v335_v44 = vadd.f32 %v334_v43, %v333_v42 }
 0x150   :  { %v257_v46 = vpop.permute.xlu1 %256 }
 0x151   :  { %v264_v47 = vmul.f32 %v332_v41, %v257_v46 }
 0x153   :  { %v273_v48 = vadd.f32 %v313_v45, %v264_v47 }
 0x154   :  { %v262_v49 = vpop.permute.xlu1 %261 }
 0x155   :  { %275 = vst [vmem:[#allocation8] sm:$0xff] %v273_v48  ;;  %v265_v50 = vmul.f32 %v335_v44, %v262_v49 }
 0x157   :  { %v274_v51 = vadd.f32 %v313_v45, %v265_v50 }
 0x159   :  { %276 = vst [vmem:[#allocation8 + $0x8] sm:$0xff] %v274_v51 }
 0x15a   :  { %423 = shalt.err (!%p420_p6)
}
 0x15b   :  { %s424_s17 = scalar_lea.hbm %s516_s3, 256 }
 0x15c   :  { %p425_p7 = scmp.ne.s32.totalorder %s516_s3, %s424_s17  ;;  %p428_p8 = scmp.lt.u32.totalorder %s424_s17, %s516_s3 }
 0x15e   :  { %p430_p9 = pnand %p428_p8, %p425_p7 }
 0x160   :  { %433 = shalt.err (!%p430_p9)
}
 0x161   :  { %288 = dma.vmem_to_hbm [thread:$0]  %s283_s14, 256, %s516_s3, [#allocation5], %s441_s22, %s441_s22, %s442_s23  }
 0x162   :  { %438 = dma.done.wait [#allocation5], 256  }
 0x163   :  { %439 = vsyncadd [#allocation5], 4294967040 }
 0x164   :  { %292 = vsyncpa [#allocation4], 1 }
 0x165   :  { %293 = vsyncpa [#allocation7], 1 }
 0x166   :  { %294 = vsyncpa [#allocation5], 1 }

</bundles_post_ra>
